<compile_context>
chip_gen: v7x
topology: tpu7x:2x2x1
jax: 0.10.0
libtpu: 0.0.40
codegen_flags: <defaults>
</compile_context>

<pallas_src>
import functools

import jax
import jax.numpy as jnp
from jax import lax
from jax.experimental import pallas as pl
from jax.experimental.pallas import tpu as pltpu

_VMEM_LIMIT_BYTES = 64 * 1024 * 1024   # raise scoped VMEM (v5e default 16 MiB); <= v7x physical


# -----------------------------------------------------------------------------
# tiling helpers
# -----------------------------------------------------------------------------
def _row_tile(n, cap=512):
    """Largest row tile that divides n: full n if it fits the cap, else the biggest
    multiple-of-8 divisor <= cap. Big tiles amortize the ~0.35us per-step overhead."""
    if n <= cap:
        return n
    for t in (512, 256, 128, 64, 32, 16, 8):
        if t <= cap and n % t == 0:
            return t
    return n


def _ff_tile(f, cap=2048):
    """FFN hidden-dim tile: full f if small, else the biggest multiple-of-128 divisor
    <= cap (lane-dim constraint for the w1 [D, tf] block)."""
    if f <= cap:
        return f
    t = (cap // 128) * 128
    while t >= 128:
        if f % t == 0:
            return t
        t -= 128
    return f


# -----------------------------------------------------------------------------
# Pallas kernels
# -----------------------------------------------------------------------------
def _linear_kernel(x_ref, w_ref, b_ref, o_ref):
    # x: [tm, Din] f32, w: [Din, Dout] bf16 (pre-cast), b: [1, Dout] f32
    y = jnp.dot(x_ref[...].astype(jnp.bfloat16), w_ref[...],
                preferred_element_type=jnp.float32)
    o_ref[...] = (y + b_ref[...].astype(jnp.float32)).astype(o_ref.dtype)


def _proj_add_ln_kernel(x_ref, w_ref, b_ref, res_ref, g_ref, bt_ref, o_ref, *, eps):
    # LayerNorm(residual + (x @ w + b)) over the last dim.  w is bf16.
    y = jnp.dot(x_ref[...].astype(jnp.bfloat16), w_ref[...],
                preferred_element_type=jnp.float32)
    s = y + b_ref[...].astype(jnp.float32) + res_ref[...].astype(jnp.float32)
    mean = jnp.mean(s, axis=-1, keepdims=True)
    var = jnp.mean(jnp.square(s - mean), axis=-1, keepdims=True)
    norm = (s - mean) * lax.rsqrt(var + eps)
    o_ref[...] = (norm * g_ref[...].astype(jnp.float32)
                  + bt_ref[...].astype(jnp.float32)).astype(o_ref.dtype)


def _ffn_add_ln_kernel(x_ref, w1_ref, b1_ref, w2_ref, b2_ref, g_ref, bt_ref,
                       o_ref, acc_ref, *, eps):
    # LayerNorm(x + W2 @ relu(W1 @ x + b1) + b2), with the hidden dim F tiled on
    # grid axis 1 ('arbitrary') and accumulated in a [tm, D] f32 VMEM scratch.
    fi = pl.program_id(1)

    @pl.when(fi == 0)
    def _():
        acc_ref[...] = jnp.zeros_like(acc_ref)

    xb = x_ref[...].astype(jnp.bfloat16)
    h = jnp.dot(xb, w1_ref[...], preferred_element_type=jnp.float32)
    h = jnp.maximum(h + b1_ref[...].astype(jnp.float32), 0.0)
    acc_ref[...] += jnp.dot(h.astype(jnp.bfloat16), w2_ref[...],
                            preferred_element_type=jnp.float32)

    @pl.when(fi == pl.num_programs(1) - 1)
    def _():
        s = acc_ref[...] + b2_ref[...].astype(jnp.float32) + x_ref[...].astype(jnp.float32)
        mean = jnp.mean(s, axis=-1, keepdims=True)
        var = jnp.mean(jnp.square(s - mean), axis=-1, keepdims=True)
        norm = (s - mean) * lax.rsqrt(var + eps)
        o_ref[...] = (norm * g_ref[...].astype(jnp.float32)
                      + bt_ref[...].astype(jnp.float32)).astype(o_ref.dtype)


def _mha_core_kernel(q_ref, kv_ref, bias_ref, ctx_ref, attn_ref, *, num_heads, head_dim):
    # Per (batch, q-tile): q [tq, D], kv [Sk, 2D] (k | v packed along lanes),
    # bias [1, Sk] or [tq, Sk] (already scaled by -1e9).  Heads stay packed in the
    # lane dim (no HBM transposes); per-head contexts are stored straight into the
    # lane-dense ctx block.
    d_model = num_heads * head_dim
    tq = q_ref.shape[0]
    sk = kv_ref.shape[0]

    # Cast once per block (not per head); softmax math stays f32.
    q = q_ref[...].astype(jnp.bfloat16)                 # [tq, D]
    kv = kv_ref[...].astype(jnp.bfloat16)               # [Sk, 2D]
    k = kv[:, :d_model]
    v = kv[:, d_model:]
    # Hoist the bias broadcast out of the statically-unrolled head loop.
    bias = jnp.broadcast_to(bias_ref[...].astype(jnp.float32), (tq, sk))
    scale = jnp.float32(1.0 / (head_dim ** 0.5))

    # TODO(synk): replace with a single batched einsum / flash-style kernel for
    # production head_dims (>=64); at these demo dims the unrolled loop is fine.
    for h in range(num_heads):
        sl = slice(h * head_dim, (h + 1) * head_dim)
        # logits[q, k] = sum_d q[q, d] * k[k, d]  (contraction on last dims)
        logits = lax.dot_general(q[:, sl], k[:, sl], (((1,), (1,)), ((), ())),
                                 preferred_element_type=jnp.float32)
        logits = logits * scale + bias
        m = jnp.max(logits, axis=-1, keepdims=True)
        e = jnp.exp(logits - m)
        p = e / jnp.sum(e, axis=-1, keepdims=True)      # exact softmax (weights are returned)
        attn_ref[h] = p.astype(attn_ref.dtype)
        ctx_ref[:, sl] = jnp.dot(p.astype(jnp.bfloat16), v[:, sl],
                                 preferred_element_type=jnp.float32).astype(ctx_ref.dtype)


# -----------------------------------------------------------------------------
# pallas_call wrappers
# -----------------------------------------------------------------------------
def linear(x, w, b):
    """x: [N, Din] f32 @ w: [Din, Dout] (bf16) + b -> [N, Dout]."""
    N, Din = x.shape
    Dout = w.shape[1]
    w = w.astype(jnp.bfloat16)                          # no-op if pre-cast
    tm = _row_tile(N)
    return pl.pallas_call(
        _linear_kernel,
        out_shape=jax.ShapeDtypeStruct((N, Dout), x.dtype),
        grid=(N // tm,),
        in_specs=[
            pl.BlockSpec((tm, Din), lambda i: (i, 0)),
            pl.BlockSpec((Din, Dout), lambda i: (0, 0)),
            pl.BlockSpec((1, Dout), lambda i: (0, 0)),
        ],
        out_specs=pl.BlockSpec((tm, Dout), lambda i: (i, 0)),
        compiler_params=pltpu.CompilerParams(
            dimension_semantics=("parallel",),
            vmem_limit_bytes=_VMEM_LIMIT_BYTES),
    )(x, w, b.reshape(1, Dout))


def proj_add_layernorm(x, w, b, residual, gamma, beta, eps=1e-6):
    """LayerNorm(residual + (x @ w + b)).  x, residual: [N, D]; w bf16."""
    N, Din = x.shape
    D = w.shape[1]
    w = w.astype(jnp.bfloat16)
    tm = _row_tile(N)
    return pl.pallas_call(
        functools.partial(_proj_add_ln_kernel, eps=eps),
        out_shape=jax.ShapeDtypeStruct((N, D), x.dtype),
        grid=(N // tm,),
        in_specs=[
            pl.BlockSpec((tm, Din), lambda i: (i, 0)),
            pl.BlockSpec((Din, D), lambda i: (0, 0)),
            pl.BlockSpec((1, D), lambda i: (0, 0)),
            pl.BlockSpec((tm, D), lambda i: (i, 0)),
            pl.BlockSpec((1, D), lambda i: (0, 0)),
            pl.BlockSpec((1, D), lambda i: (0, 0)),
        ],
        out_specs=pl.BlockSpec((tm, D), lambda i: (i, 0)),
        compiler_params=pltpu.CompilerParams(
            dimension_semantics=("parallel",),
            vmem_limit_bytes=_VMEM_LIMIT_BYTES),
    )(x, w, b.reshape(1, D), residual, gamma.reshape(1, D), beta.reshape(1, D))


def ffn_add_layernorm(x, w1, b1, w2, b2, gamma, beta, eps=1e-6):
    """LayerNorm(x + FFN(x)) with the hidden dim F tiled ('arbitrary' axis + VMEM acc)."""
    N, D = x.shape
    F = w1.shape[1]
    w1 = w1.astype(jnp.bfloat16)
    w2 = w2.astype(jnp.bfloat16)
    tm = _row_tile(N)
    tf = _ff_tile(F)
    return pl.pallas_call(
        functools.partial(_ffn_add_ln_kernel, eps=eps),
        out_shape=jax.ShapeDtypeStruct((N, D), x.dtype),
        grid=(N // tm, F // tf),
        in_specs=[
            pl.BlockSpec((tm, D), lambda i, f: (i, 0)),
            pl.BlockSpec((D, tf), lambda i, f: (0, f)),
            pl.BlockSpec((1, tf), lambda i, f: (0, f)),
            pl.BlockSpec((tf, D), lambda i, f: (f, 0)),
            pl.BlockSpec((1, D), lambda i, f: (0, 0)),
            pl.BlockSpec((1, D), lambda i, f: (0, 0)),
            pl.BlockSpec((1, D), lambda i, f: (0, 0)),
        ],
        out_specs=pl.BlockSpec((tm, D), lambda i, f: (i, 0)),
        scratch_shapes=[pltpu.VMEM((tm, D), jnp.float32)],
        compiler_params=pltpu.CompilerParams(
            dimension_semantics=("parallel", "arbitrary"),
            vmem_limit_bytes=_VMEM_LIMIT_BYTES),
    )(x, w1, b1.reshape(1, F), w2, b2.reshape(1, D),
      gamma.reshape(1, D), beta.reshape(1, D))


def mha_core(q, kv, bias, num_heads, attn_dtype=jnp.float32):
    """q: [B,Sq,D], kv: [B,Sk,2D], bias: [B,1,Sk] or [B,Sq,Sk] (additive, -1e9-scaled)
    -> (ctx [B,Sq,D], attn [B,H,Sq,Sk])."""
    B, Sq, D = q.shape
    Sk = kv.shape[1]
    Dh = D // num_heads
    bq = bias.shape[1]                                   # 1 (per-key) or Sq (per-query/causal)
    tq = _row_tile(Sq)

    if bq == 1:
        bias_spec = pl.BlockSpec((None, 1, Sk), lambda b, qi: (b, 0, 0))
    else:
        bias_spec = pl.BlockSpec((None, tq, Sk), lambda b, qi: (b, qi, 0))

    ctx, attn = pl.pallas_call(
        functools.partial(_mha_core_kernel, num_heads=num_heads, head_dim=Dh),
        out_shape=(
            jax.ShapeDtypeStruct((B, Sq, D), q.dtype),
            jax.ShapeDtypeStruct((B, num_heads, Sq, Sk), attn_dtype),
        ),
        grid=(B, Sq // tq),
        in_specs=[
            pl.BlockSpec((None, tq, D), lambda b, qi: (b, qi, 0)),
            pl.BlockSpec((None, Sk, 2 * D), lambda b, qi: (b, 0, 0)),   # resident across qi
            bias_spec,
        ],
        out_specs=(
            pl.BlockSpec((None, tq, D), lambda b, qi: (b, qi, 0)),
            pl.BlockSpec((None, num_heads, tq, Sk), lambda b, qi: (b, 0, qi, 0)),
        ),
        compiler_params=pltpu.CompilerParams(
            dimension_semantics=("parallel", "parallel"),
            vmem_limit_bytes=_VMEM_LIMIT_BYTES),
    )(q, kv, bias)
    return ctx, attn


# -----------------------------------------------------------------------------
# DecoderLayer forward
# -----------------------------------------------------------------------------
def _mask_to_bias(mask, batch, seq_k):
    """mask broadcastable to [B, 1, Sq_or_1, Sk] with 1.0 = masked -> additive bias
    [B, 1, Sk] (per-key) or [B, Sq, Sk] (per-query, e.g. causal+padding combined)."""
    m = jnp.asarray(mask, jnp.float32).reshape(batch, -1, seq_k)
    return m * jnp.float32(-1e9)


def decoder_layer(trg_emb, combined_mask, enc_output, input_padding_mask, params,
                  num_heads, attn_dtype=jnp.float32):
    B, St, D = trg_emb.shape
    Ss = enc_output.shape[1]
    Nt, Ns = B * St, B * Ss

    x2d = trg_emb.reshape(Nt, D)
    enc2d = enc_output.reshape(Ns, D)

    # Additive mask biases precomputed once (hoisted out of the kernels).
    self_bias = _mask_to_bias(combined_mask, B, St)          # [B, St, St] or [B, 1, St]
    cross_bias = _mask_to_bias(input_padding_mask, B, Ss)    # [B, 1, Ss]

    # --- block 1: self attention (fused QKV projection) ---
    p1 = params["mha1"]
    qkv = linear(x2d, p1["w_qkv"], p1["b_qkv"])              # [Nt, 3D]
    q1 = qkv[:, :D].reshape(B, St, D)
    kv1 = qkv[:, D:].reshape(B, St, 2 * D)
    ctx1, attn1 = mha_core(q1, kv1, self_bias, num_heads, attn_dtype)
    out1_2d = proj_add_layernorm(ctx1.reshape(Nt, D), p1["wo"], p1["bo"],
                                 x2d, params["ln1_g"], params["ln1_b"])

    # --- block 2: cross attention (Q from decoder, fused KV from encoder) ---
    p2 = params["mha2"]
    q2 = linear(out1_2d, p2["wq"], p2["bq"]).reshape(B, St, D)
    kv2 = linear(enc2d, p2["w_kv"], p2["b_kv"]).reshape(B, Ss, 2 * D)
    ctx2, attn2 = mha_core(q2, kv2, cross_bias, num_heads, attn_dtype)
    out2_2d = proj_add_layernorm(ctx2.reshape(Nt, D), p2["wo"], p2["bo"],
                                 out1_2d, params["ln2_g"], params["ln2_b"])

    # --- block 3: fused FFN + residual + LayerNorm ---
    out3_2d = ffn_add_layernorm(out2_2d, params["ffn_w1"], params["ffn_b1"],
                                params["ffn_w2"], params["ffn_b2"],
                                params["ln3_g"], params["ln3_b"])
    return out3_2d.reshape(B, St, D), attn1, attn2


# -----------------------------------------------------------------------------
# Deterministic parameter construction (weights stored bf16, biases/LN params f32)
# -----------------------------------------------------------------------------
def _init_linear(key, d_in, d_out, scale=0.05):
    kw, kb = jax.random.split(key)
    w = jax.random.normal(kw, (d_in, d_out), jnp.float32) * scale   # stored [Din, Dout]
    b = jax.random.normal(kb, (d_out,), jnp.float32) * scale
    return w, b


def init_decoder_layer_params(key, dim, ff_size):
    ks = jax.random.split(key, 13)
    bf16 = jnp.bfloat16
    # mha1 (self-attention): fused QKV weight [D, 3D]
    wq1, bq1 = _init_linear(ks[0], dim, dim)
    wk1, bk1 = _init_linear(ks[1], dim, dim)
    wv1, bv1 = _init_linear(ks[2], dim, dim)
    wo1, bo1 = _init_linear(ks[3], dim, dim)
    mha1 = dict(w_qkv=jnp.concatenate([wq1, wk1, wv1], axis=1).astype(bf16),
                b_qkv=jnp.concatenate([bq1, bk1, bv1]),
                wo=wo1.astype(bf16), bo=bo1)
    # mha2 (cross-attention): Q separate, fused KV weight [D, 2D]
    wq2, bq2 = _init_linear(ks[4], dim, dim)
    wk2, bk2 = _init_linear(ks[5], dim, dim)
    wv2, bv2 = _init_linear(ks[6], dim, dim)
    wo2, bo2 = _init_linear(ks[7], dim, dim)
    mha2 = dict(wq=wq2.astype(bf16), bq=bq2,
                w_kv=jnp.concatenate([wk2, wv2], axis=1).astype(bf16),
                b_kv=jnp.concatenate([bk2, bv2]),
                wo=wo2.astype(bf16), bo=bo2)

    params = dict(mha1=mha1, mha2=mha2)
    fw1, fb1 = _init_linear(ks[8], dim, ff_size)
    fw2, fb2 = _init_linear(ks[9], ff_size, dim)
    params["ffn_w1"], params["ffn_b1"] = fw1.astype(bf16), fb1
    params["ffn_w2"], params["ffn_b2"] = fw2.astype(bf16), fb2
    # LayerNorm affine params (ones/zeros perturbed deterministically)
    params["ln1_g"] = jnp.ones((dim,), jnp.float32) + 0.01 * jax.random.normal(ks[10], (dim,))
    params["ln1_b"] = 0.01 * jax.random.normal(ks[10], (dim,))
    params["ln2_g"] = jnp.ones((dim,), jnp.float32) + 0.01 * jax.random.normal(ks[11], (dim,))
    params["ln2_b"] = 0.01 * jax.random.normal(ks[11], (dim,))
    params["ln3_g"] = jnp.ones((dim,), jnp.float32) + 0.01 * jax.random.normal(ks[12], (dim,))
    params["ln3_b"] = 0.01 * jax.random.normal(ks[12], (dim,))
    return params


# -----------------------------------------------------------------------------
if __name__ == "__main__":
    # Small config: dim=32, heads=4 (head_dim=8), ff_size=64, batch=2, trg_seq=8, src_seq=16
    DIM, HEADS, FF = 32, 4, 64
    B, TRG_S, SRC_S = 2, 8, 16

    key = jax.random.PRNGKey(0)
    k_par, k_trg, k_enc, k_m1, k_m2 = jax.random.split(key, 5)

    params = init_decoder_layer_params(k_par, DIM, FF)

    trg_emb = jax.random.normal(k_trg, (B, TRG_S, DIM), jnp.float32)
    enc_output = jax.random.normal(k_enc, (B, SRC_S, DIM), jnp.float32)

    # Decoder "combined" mask = look-ahead (causal) + target padding -> [B, 1, St, St]
    causal = jnp.triu(jnp.ones((TRG_S, TRG_S), jnp.float32), k=1)[None, None]    # [1,1,St,St]
    trg_pad = (jax.random.uniform(k_m1, (B, 1, 1, TRG_S)) < 0.2).astype(jnp.float32)
    combined_mask = jnp.maximum(causal, trg_pad)                                  # [B,1,St,St]
    # Encoder padding mask -> [B, 1, 1, Ss]
    input_padding_mask = (jax.random.uniform(k_m2, (B, 1, 1, SRC_S)) < 0.2).astype(jnp.float32)

    out3, attn1, attn2 = decoder_layer(
        trg_emb, combined_mask, enc_output, input_padding_mask, params, HEADS
    )
    jax.block_until_ready((out3, attn1, attn2))

    assert out3.shape == (B, TRG_S, DIM)
    assert attn1.shape == (B, HEADS, TRG_S, TRG_S)
    assert attn2.shape == (B, HEADS, TRG_S, SRC_S)
    assert bool(jnp.all(jnp.isfinite(out3)))
    assert bool(jnp.all(jnp.isfinite(attn1)))
    assert bool(jnp.all(jnp.isfinite(attn2)))
    # exact-softmax check (rows of returned attention weights sum to 1)
    assert bool(jnp.allclose(jnp.sum(attn1, axis=-1), 1.0, atol=1e-3))
    assert bool(jnp.allclose(jnp.sum(attn2, axis=-1), 1.0, atol=1e-3))

    print("KERNEL_OK")
</pallas_src>

<mosaic_0001>
module attributes {stable_mosaic.version = 11 : i64} {
  func.func @_linear_kernel(%arg0: i32, %arg1: memref<16x32xf32, #tpu.memory_space<vmem>>, %arg2: memref<32x96xbf16, #tpu.memory_space<vmem>>, %arg3: memref<1x96xf32, #tpu.memory_space<vmem>>, %arg4: memref<16x96xf32, #tpu.memory_space<vmem>>) attributes {dimension_semantics = [#tpu.dimension_semantics<parallel>], iteration_bounds = array<i64: 1>, scalar_prefetch = 0 : i64, scratch_operands = 0 : i64, tpu.core_type = #tpu.core_type<tc>, window_params = [{transform_indices = @transform_0, window_bounds = array<i64: 16, 32>}, {pipeline_mode = #tpu.pipeline_mode<synchronous>, transform_indices = @transform_1, window_bounds = array<i64: 32, 96>}, {pipeline_mode = #tpu.pipeline_mode<synchronous>, transform_indices = @transform_2, window_bounds = array<i64: 1, 96>}, {transform_indices = @transform_3, window_bounds = array<i64: 16, 96>}]} {
    %c0 = arith.constant 0 : index
    %c0_0 = arith.constant 0 : index
    %0 = vector.load %arg1[%c0, %c0_0] : memref<16x32xf32, #tpu.memory_space<vmem>>, vector<16x32xf32>
    %1 = arith.truncf %0 : vector<16x32xf32> to vector<16x32xbf16>
    %c0_1 = arith.constant 0 : index
    %c0_2 = arith.constant 0 : index
    %2 = vector.load %arg2[%c0_1, %c0_2] : memref<32x96xbf16, #tpu.memory_space<vmem>>, vector<32x96xbf16>
    %cst = arith.constant dense<0.000000e+00> : vector<16x96xf32>
    %3 = tpu.matmul %1, %2, %cst {dimension_numbers = #tpu.dot_dimension_numbers<[1], [0], [0], [1], [0, 0, 1, 1], [], []>} : vector<16x32xbf16>, vector<32x96xbf16>, vector<16x96xf32> -> vector<16x96xf32>
    %c0_3 = arith.constant 0 : index
    %c0_4 = arith.constant 0 : index
    %4 = vector.load %arg3[%c0_3, %c0_4] : memref<1x96xf32, #tpu.memory_space<vmem>>, vector<1x96xf32>
    %5 = vector.broadcast %4 : vector<1x96xf32> to vector<16x96xf32>
    %6 = arith.addf %3, %5 : vector<16x96xf32>
    %c0_5 = arith.constant 0 : index
    %c0_6 = arith.constant 0 : index
    %7 = vector.load %arg4[%c0_5, %c0_6] : memref<16x96xf32, #tpu.memory_space<vmem>>, vector<16x96xf32>
    tpu.vector_store %arg4[%c0_5, %c0_6], %6 {strides = array<i32>} : memref<16x96xf32, #tpu.memory_space<vmem>>, vector<16x96xf32>,
    return
  }
  func.func @transform_0(%arg0: i32) -> (i32, i32) {
    %c0_i32 = arith.constant 0 : i32
    %c0_i32_0 = arith.constant 0 : i32
    return %arg0, %c0_i32 : i32, i32
  }
  func.func @transform_1(%arg0: i32) -> (i32, i32) {
    %c0_i32 = arith.constant 0 : i32
    %c0_i32_0 = arith.constant 0 : i32
    %c0_i32_1 = arith.constant 0 : i32
    return %c0_i32, %c0_i32_0 : i32, i32
  }
  func.func @transform_2(%arg0: i32) -> (i32, i32) {
    %c0_i32 = arith.constant 0 : i32
    %c0_i32_0 = arith.constant 0 : i32
    %c0_i32_1 = arith.constant 0 : i32
    return %c0_i32, %c0_i32_0 : i32, i32
  }
  func.func @transform_3(%arg0: i32) -> (i32, i32) {
    %c0_i32 = arith.constant 0 : i32
    %c0_i32_0 = arith.constant 0 : i32
    return %arg0, %c0_i32 : i32, i32
  }
}

</mosaic_0001>

<bundles_post_ra>
// kernel: tpu_custom_call.1
= control target key start
LH: loop header
LB: loop body
LE: loop exit
PB: predicated region body
PF: predicated region fallthrough
CT: control target
= control target key end

     0   :  { %8 = vsyncpa [#allocation3], 0  ;;  %s352_s0 = inlined_call_operand.hbm [shape: f32[16,32], index: 0, kind: input, shape index: {}]   ;;  %s353_s1 = inlined_call_operand.hbm [shape: bf16[32,96], index: 1, kind: input, shape index: {}]   ;;  %s354_s2 = inlined_call_operand.hbm [shape: f32[1,96], index: 2, kind: input, shape index: {}]   ;;  %s355_s3 = inlined_call_operand.hbm [shape: f32[16,96], index: 3, kind: output, shape index: {}]  }
   0x1   :  { %9 = vsyncpa [#allocation6], 0 }
   0x2   :  { %10 = vsyncpa [#allocation4], 0  ;;  %s268_s12 = smov [#allocation5]   ;;  %s174_s16 = scalar_lea.hbm %s353_s1, 256 }
   0x3   :  { %s28_s13 = sshll.u32 %s268_s12, 4  ;;  %p175_p0 = scmp.ne.s32.totalorder %s353_s1, %s174_s16  ;;  %s29_s13 = int_to_ptr.vmem [resolvable:$true] %s28_s13 }
   0x4   :  { %p178_p1 = scmp.lt.u32.totalorder %s174_s16, %s353_s1 }
   0x6   :  { %p180_p2 = pnand %p178_p1, %p175_p0 }
   0x8   :  { %183 = shalt.err (!%p180_p2)
}
   0x9   :  { %s184_s21 = scalar_lea.vmem %s29_s13, 256  ;;  %p189_p4 = scmp.lt.s32.totalorder %s29_s13, %s29_s13 }
   0xa   :  { %p185_p3 = scmp.ne.s32.totalorder %s29_s13, %s184_s21  ;;  %p190_p5 = scmp.lt.s32.totalorder %s184_s21, %s184_s21 }
   0xc   :  { %p191_p6 = por %p190_p5, %p189_p4 }
   0xe   :  { %p192_p7 = pnand %p191_p6, %p185_p3 }
  0x10   :  { %195 = shalt.err (!%p192_p7)
}
  0x11   :  { %s269_s22 = smov 64   ;;  %s270_s23 = smov 4  }
  0x12   :  { %34 = dma.hbm_to_vmem [thread:$0]  %s353_s1, 256, %s29_s13, [#allocation6], %s269_s22, %s269_s22, %s270_s23  }
  0x13   :  { %s271_s26 = smov [#allocation2]   ;;  %s196_s30 = scalar_lea.hbm %s352_s0, 256 }
  0x14   :  { %s16_s27 = sshll.u32 %s271_s26, 4  ;;  %p197_p8 = scmp.ne.s32.totalorder %s352_s0, %s196_s30  ;;  %s17_s27 = int_to_ptr.vmem [resolvable:$true] %s16_s27 }
  0x15   :  { %p200_p9 = scmp.lt.u32.totalorder %s196_s30, %s352_s0 }
  0x17   :  { %p202_p10 = pnand %p200_p9, %p197_p8 }
  0x19   :  { %205 = shalt.err (!%p202_p10)
}
  0x1a   :  { %s206_s8 = scalar_lea.vmem %s17_s27, 256  ;;  %p211_p12 = scmp.lt.s32.totalorder %s17_s27, %s17_s27 }
  0x1b   :  { %p207_p11 = scmp.ne.s32.totalorder %s17_s27, %s206_s8  ;;  %p212_p13 = scmp.lt.s32.totalorder %s206_s8, %s206_s8 }
  0x1d   :  { %p213_p0 = por %p212_p13, %p211_p12 }
  0x1f   :  { %p214_p1 = pnand %p213_p0, %p207_p11 }
  0x21   :  { %217 = shalt.err (!%p214_p1)
}
  0x22   :  { %s272_s1 = smov 128   ;;  %s273_s9 = smov 8  }
  0x23   :  { %22 = dma.hbm_to_vmem [thread:$0]  %s352_s0, 256, %s17_s27, [#allocation3], %s272_s1, %s272_s1, %s273_s9  }
  0x24   :  { %s274_s12 = smov [#allocation7]   ;;  %s218_s16 = scalar_lea.hbm %s354_s2, 16 }
  0x25   :  { %s41_s13 = sshll.u32 %s274_s12, 4  ;;  %p219_p2 = scmp.ne.s32.totalorder %s354_s2, %s218_s16  ;;  %s42_s13 = int_to_ptr.vmem [resolvable:$true] %s41_s13 }
  0x26   :  { %p222_p3 = scmp.lt.u32.totalorder %s218_s16, %s354_s2 }
  0x28   :  { %p224_p4 = pnand %p222_p3, %p219_p2 }
  0x2a   :  { %227 = shalt.err (!%p224_p4)
}
  0x2b   :  { %s228_s21 = scalar_lea.vmem %s42_s13, 16  ;;  %s232_s0 = scalar_lea.vmem %s42_s13, 32 }
  0x2c   :  { %p229_p5 = scmp.ne.s32.totalorder %s42_s13, %s228_s21  ;;  %p233_p6 = scmp.lt.s32.totalorder %s42_s13, %s42_s13 }
  0x2d   :  { %p234_p7 = scmp.lt.s32.totalorder %s232_s0, %s228_s21 }
  0x2f   :  { %p235_p8 = por %p234_p7, %p233_p6 }
  0x31   :  { %p236_p9 = pnand %p235_p8, %p229_p5 }
  0x33   :  { %239 = shalt.err (!%p236_p9)
}
  0x34   :  { %44 = dma.hbm_to_vmem [thread:$0]  %s354_s2, 16, %s42_s13, [#allocation6]  }
  0x35   :  { %262 = dma.done.wait [#allocation3], 256  }
  0x36   :  { %263 = vsyncadd [#allocation3], 4294967040 }
  0x37   :  { %264 = dma.done.wait [#allocation6], 272  }
  0x38   :  { %265 = vsyncadd [#allocation6], 4294967024  ;;  %v275_v0 = vmov 0.0   ;;  %vm276_vm0 = vmmov 0   ;;  %v172_v1 = vld [vmem:[#allocation5] sm:$0xff]   ;;  %v173_v2 = vld [vmem:[#allocation5 + $0x8] sm:$0xff]  }
  0x39   :  { %154 = vmatprep.subr.bf16.mxu0 %v275_v0  ;;  %158 = vmatprep.mubr.msk.bf16.mxu0 %vm276_vm0, %v275_v0  ;;  %v55_v3 = vld [vmem:[#allocation2] sm:$0xff]  ;;  %v56_v4 = vld [vmem:[#allocation2 + $0x8] sm:$0xff]  ;;  %vm81_vm1 = vcmask 261120   ;;  %vm126_vm2 = vcmask 785408   ;;  %s277_s2 = smov [#allocation8]  }
  0x3a   :  { %155 = vmatpush3.bf16.msra.mxu0 %v172_v1  ;;  %v57_v5 = vpack.c.bf16 %v56_v4, %v55_v3  ;;  %v147_v6 = vld [vmem:[#allocation7] ss:$0 sm:$0xff]  ;;  %s134_s24 = sshll.u32 %s277_s2, 4  ;;  %s135_s24 = int_to_ptr.vmem [resolvable:$true] %s134_s24 }
  0x3b   :  { %156 = vmatprep.subr.bf16.mxu0 %v275_v0  ;;  %s240_s25 = scalar_lea.vmem %s135_s24, 256  ;;  %p245_p11 = scmp.lt.s32.totalorder %s135_s24, %s135_s24 }
  0x3c   :  { %p241_p10 = scmp.ne.s32.totalorder %s135_s24, %s240_s25  ;;  %p246_p12 = scmp.lt.s32.totalorder %s240_s25, %s240_s25 }
  0x3e   :  { %157 = vmatpush3.bf16.msra.mxu0 %v173_v2  ;;  %p247_p13 = por %p246_p12, %p245_p11 }
  0x40   :  { %p248_p0 = pnand %p247_p13, %p241_p10 }
  0x41   :  { %159 = vmatmul.mubr.msk.bf16.vlgmr.msra.gmra.mrb[0].mxu0 %vm81_vm1, %v57_v5 }
 0x114   :  { %v119_v7 = vpop.f32.mrb[0].mxu0 }
 0x115   :  { %v120_v8 = vadd.f32 %v147_v6, %v119_v7  ;;  %v160_v9 = vpop.f32.mrb[1].mxu0 }
 0x116   :  { %v122_v10 = vpop.f32.mrb[2].mxu0 }
 0x117   :  { %v123_v11 = vadd.f32 %v147_v6, %v122_v10  ;;  %v161_v12 = vpop.f32.mrb[3].mxu0  ;;  %127 = vst.msk [vmem:[#allocation8] sm:$0xff] %vm126_vm2, %v120_v8 }
 0x119   :  { %128 = vst.msk [vmem:[#allocation8 + $0x8] sm:$0xff] %vm126_vm2, %v123_v11 }
 0x11a   :  { %251 = shalt.err (!%p248_p0)
}
 0x11b   :  { %s252_s28 = scalar_lea.hbm %s355_s3, 256 }
 0x11c   :  { %p253_p1 = scmp.ne.s32.totalorder %s355_s3, %s252_s28  ;;  %p256_p2 = scmp.lt.u32.totalorder %s252_s28, %s355_s3 }
 0x11e   :  { %p258_p3 = pnand %p256_p2, %p253_p1 }
 0x120   :  { %261 = shalt.err (!%p258_p3)
}
 0x121   :  { %140 = dma.vmem_to_hbm [thread:$0]  %s135_s24, 256, %s355_s3, [#allocation4], %s272_s1, %s272_s1, %s273_s9  }
 0x122   :  { %266 = dma.done.wait [#allocation4], 256  }
 0x123   :  { %267 = vsyncadd [#allocation4], 4294967040 }
 0x124   :  { %144 = vsyncpa [#allocation3], 1 }
 0x125   :  { %145 = vsyncpa [#allocation6], 1 }
 0x126   :  { %146 = vsyncpa [#allocation4], 1 }

</bundles_post_ra>
